<compile_context>
chip_gen: v5e
topology: v5e:2x2
jax: 0.10.0
libtpu: 0.0.40
codegen_flags: <defaults>
</compile_context>

<pallas_src>
import functools

import jax
import jax.numpy as jnp
from jax.experimental import pallas as pl
from jax.experimental.pallas import tpu as pltpu


def _round_up(x: int, m: int) -> int:
    return ((x + m - 1) // m) * m


def _largest_divisor_tile(dim: int, unit: int, cap: int) -> int:
    """Largest t <= cap with t % unit == 0 and dim % t == 0 (dim is a multiple of unit)."""
    cap = max(unit, min(cap, dim))
    best = unit
    for t in range(unit, cap + 1, unit):
        if dim % t == 0:
            best = t
    return best


def _vmem_budget_bytes() -> int:
    """Usable scoped-VMEM budget, with headroom under the chip's physical capacity."""
    cap = 64 * 1024 * 1024  # conservative default (v7x has 64 MiB per TensorCore)
    try:
        cap = int(pltpu.get_tpu_info().vmem_capacity_bytes)
    except Exception:
        pass
    return min(int(cap * 0.70), 100 * 1024 * 1024)


def _plan_tiles(B_pad, K_pad, N_pad, c_item, out_item, needs_acc, budget):
    """Pick (tile_b, tile_k, tile_n) as divisors of the padded dims, sized to VMEM."""

    # ---- Plan 1: whole padded weight VMEM-resident -> each operand read once. ----
    def resident_cost(tb):
        c = 2 * K_pad * N_pad * c_item          # weight (double-buffered, DMA'd once)
        c += 2 * tb * K_pad * c_item            # x block
        c += 2 * tb * N_pad * out_item          # out block
        c += 2 * N_pad * 4                      # bias block (f32)
        if needs_acc:
            c += tb * N_pad * 4                 # f32 accumulator scratch
        return c

    if resident_cost(8) <= budget:
        tile_k, tile_n = K_pad, N_pad
        tile_b = _largest_divisor_tile(B_pad, 8, 512)
        while tile_b > 8 and resident_cost(tile_b) > budget:
            tile_b = _largest_divisor_tile(B_pad, 8, tile_b - 8)
        return tile_b, tile_k, tile_n

    # ---- Plan 2: tile K and N (large layers). Big slabs to amortize step overhead. ----
    tile_n = _largest_divisor_tile(N_pad, 128, 512)
    tile_k = _largest_divisor_tile(K_pad, 128, 2048)
    tile_b = _largest_divisor_tile(B_pad, 8, 512)

    def tiled_cost(tb, tk, tn):
        wbuf = 3 if K_pad // tk >= 4 else 2     # deeper buffering on the K-streamed weight
        c = wbuf * tk * tn * c_item
        c += 2 * tb * tk * c_item
        c += 2 * tb * tn * out_item
        c += 2 * tn * 4
        if needs_acc:
            c += tb * tn * 4
        return c

    while tiled_cost(tile_b, tile_k, tile_n) > budget:
        if tile_k > 128:
            tile_k = _largest_divisor_tile(K_pad, 128, tile_k // 2)
        elif tile_b > 8:
            tile_b = _largest_divisor_tile(B_pad, 8, tile_b // 2)
        elif tile_n > 128:
            tile_n = _largest_divisor_tile(N_pad, 128, tile_n // 2)
        else:
            break
    return tile_b, tile_k, tile_n


def _weight_spec(block_shape, index_map, buffer_count):
    """Weight BlockSpec, optionally with deeper pipelining on the K-streamed block."""
    if buffer_count != 2:
        try:
            return pl.BlockSpec(block_shape, index_map,
                                pipeline_mode=pl.Buffered(buffer_count))
        except (TypeError, AttributeError):
            pass  # older jax without pipeline_mode / Buffered: fall back to default
    return pl.BlockSpec(block_shape, index_map)


def _linear_kernel_f32(x_ref, w_ref, b_ref, o_ref):
    """f32 output: accumulate matmul partials directly into the output block."""
    k = pl.program_id(2)

    @pl.when(k == 0)
    def _():
        o_ref[...] = jnp.zeros_like(o_ref)

    o_ref[...] += jnp.dot(x_ref[...], w_ref[...], preferred_element_type=jnp.float32)

    @pl.when(k == pl.num_programs(2) - 1)
    def _():
        o_ref[...] += b_ref[...]


def _linear_kernel_acc(x_ref, w_ref, b_ref, o_ref, acc_ref):
    """Non-f32 output: accumulate in an f32 VMEM scratch, cast on the last K step."""
    k = pl.program_id(2)

    @pl.when(k == 0)
    def _():
        acc_ref[...] = jnp.zeros_like(acc_ref)

    acc_ref[...] += jnp.dot(x_ref[...], w_ref[...], preferred_element_type=jnp.float32)

    @pl.when(k == pl.num_programs(2) - 1)
    def _():
        o_ref[...] = (acc_ref[...] + b_ref[...]).astype(o_ref.dtype)


@functools.partial(jax.jit, static_argnames=("compute_dtype",))
def linear_prob_forward(fea, weight, bias, *, compute_dtype=None):
    """Pallas TPU implementation of nn.Linear: fea @ weight.T + bias.

    fea: (B, in_dim); weight: (out_dim, in_dim); bias: (out_dim,).
    compute_dtype: optional operand dtype for the matmul (e.g. jnp.bfloat16 for the
      native-MXU fast path on v6e/v7x). Accumulation is f32; output keeps fea.dtype.
    """
    B, in_dim = fea.shape
    out_dim, in_dim_w = weight.shape
    assert in_dim == in_dim_w and bias.shape == (out_dim,)

    out_dtype = fea.dtype
    c_dtype = jnp.dtype(compute_dtype) if compute_dtype is not None else jnp.dtype(fea.dtype)
    c_item = c_dtype.itemsize
    out_item = jnp.dtype(out_dtype).itemsize
    needs_acc = jnp.dtype(out_dtype) != jnp.dtype(jnp.float32)

    # Pad only to hardware granularity (8 sublanes / 128 lanes), NOT up to tile size.
    B_pad = _round_up(B, 8)
    K_pad = _round_up(in_dim, 128)
    N_pad = _round_up(out_dim, 128)

    budget = _vmem_budget_bytes()
    tile_b, tile_k, tile_n = _plan_tiles(
        B_pad, K_pad, N_pad, c_item, out_item, needs_acc, budget)

    # Megacore (v7x): keep at least 2 blocks on the parallel grid axes when possible.
    if (B_pad // tile_b) * (N_pad // tile_n) < 2 and B_pad >= 16:
        tile_b = min(tile_b, _largest_divisor_tile(B_pad, 8, B_pad // 2))

    grid = (B_pad // tile_b, N_pad // tile_n, K_pad // tile_k)
    gb, gn, gk = grid

    # --- One-time layout prep (XLA ops, outside the kernel). Pads are tiny (<8 / <128). ---
    x_p = fea
    if (B_pad, K_pad) != (B, in_dim):
        x_p = jnp.pad(x_p, ((0, B_pad - B), (0, K_pad - in_dim)))
    x_p = x_p.astype(c_dtype)

    w_t = jnp.transpose(weight)                              # (in_dim, out_dim), K-major
    if (K_pad, N_pad) != (in_dim, out_dim):
        w_t = jnp.pad(w_t, ((0, K_pad - in_dim), (0, N_pad - out_dim)))
    w_t = w_t.astype(c_dtype)

    b_p = bias.astype(jnp.float32)
    if N_pad != out_dim:
        b_p = jnp.pad(b_p, (0, N_pad - out_dim))
    b_p = b_p.reshape(1, N_pad)

    # --- Specs ---
    x_spec = pl.BlockSpec((tile_b, tile_k), lambda i, j, k: (i, k))
    w_spec = _weight_spec((tile_k, tile_n), lambda i, j, k: (k, j),
                          buffer_count=3 if gk >= 4 else 2)
    b_spec = pl.BlockSpec((1, tile_n), lambda i, j, k: (0, j))
    o_spec = pl.BlockSpec((tile_b, tile_n), lambda i, j, k: (i, j))

    if needs_acc:
        kernel = _linear_kernel_acc
        scratch = [pltpu.VMEM((tile_b, tile_n), jnp.float32)]
    else:
        kernel = _linear_kernel_f32
        scratch = []

    # Advisory cost estimate with the real (reuse-aware) HBM traffic.
    flops = 2 * B_pad * K_pad * N_pad
    w_reads = gb if (gn * gk) > 1 else 1   # weight re-streamed per batch tile when tiled
    x_reads = gn if gk > 1 else 1          # x re-streamed per N tile when K is tiled
    bytes_accessed = (K_pad * N_pad * c_item * w_reads
                      + B_pad * K_pad * c_item * x_reads
                      + B_pad * N_pad * out_item
                      + N_pad * 4)

    out_padded = pl.pallas_call(
        kernel,
        out_shape=jax.ShapeDtypeStruct((B_pad, N_pad), out_dtype),
        grid_spec=pltpu.PrefetchScalarGridSpec(
            num_scalar_prefetch=0,
            grid=grid,
            in_specs=[x_spec, w_spec, b_spec],
            out_specs=o_spec,
            scratch_shapes=scratch,
        ),
        compiler_params=pltpu.CompilerParams(
            dimension_semantics=("parallel", "parallel", "arbitrary"),
            vmem_limit_bytes=budget,
        ),
        cost_estimate=pl.CostEstimate(
            flops=flops, transcendentals=0, bytes_accessed=bytes_accessed
        ),
    )(x_p, w_t, b_p)

    return out_padded[:B, :out_dim]


if __name__ == "__main__":
    # Small shapes consistent with linear_prob(in_dim, out_dim)
    batch, in_dim, out_dim = 8, 32, 16

    key = jax.random.PRNGKey(0)
    k_x, k_w, k_b = jax.random.split(key, 3)

    # Deterministic parameter init (mimics nn.Linear's uniform(-1/sqrt(in), 1/sqrt(in)))
    bound = 1.0 / jnp.sqrt(jnp.float32(in_dim))
    fea = jax.random.normal(k_x, (batch, in_dim), dtype=jnp.float32)
    weight = jax.random.uniform(k_w, (out_dim, in_dim), dtype=jnp.float32,
                                minval=-bound, maxval=bound)
    bias = jax.random.uniform(k_b, (out_dim,), dtype=jnp.float32,
                              minval=-bound, maxval=bound)

    out = jax.block_until_ready(linear_prob_forward(fea, weight, bias))
    ref = fea @ weight.T + bias
    assert out.shape == (batch, out_dim)
    assert jnp.allclose(out, ref, atol=1e-5, rtol=1e-5)

    # Ragged shapes that exercise real padding/tiling (pad only to (8,128), not tile size).
    B2, K2, N2 = 300, 640, 200
    k1, k2, k3 = jax.random.split(jax.random.PRNGKey(1), 3)
    fea2 = jax.random.normal(k1, (B2, K2), dtype=jnp.float32)
    w2 = jax.random.normal(k2, (N2, K2), dtype=jnp.float32) * 0.02
    b2 = jax.random.normal(k3, (N2,), dtype=jnp.float32) * 0.02
    ref2 = fea2 @ w2.T + b2

    out2 = jax.block_until_ready(linear_prob_forward(fea2, w2, b2))
    assert out2.shape == (B2, N2)
    assert jnp.allclose(out2, ref2, atol=1e-4, rtol=1e-4)

    # bf16 operand fast path (v6e/v7x MXU); f32 accumulation, looser numerics tolerance.
    out2_bf16 = jax.block_until_ready(
        linear_prob_forward(fea2, w2, b2, compute_dtype=jnp.bfloat16))
    assert out2_bf16.shape == (B2, N2)
    assert jnp.allclose(out2_bf16, ref2, atol=5e-2, rtol=5e-2)

    print("KERNEL_OK")
</pallas_src>

<mosaic_0001>
module attributes {stable_mosaic.version = 11 : i64} {
  func.func @_linear_kernel_f32(%arg0: i32, %arg1: i32, %arg2: i32, %arg3: memref<8x128xf32, #tpu.memory_space<vmem>>, %arg4: memref<128x128xf32, #tpu.memory_space<vmem>>, %arg5: memref<1x128xf32, #tpu.memory_space<vmem>>, %arg6: memref<8x128xf32, #tpu.memory_space<vmem>>) attributes {dimension_semantics = [#tpu.dimension_semantics<parallel>, #tpu.dimension_semantics<parallel>, #tpu.dimension_semantics<arbitrary>], iteration_bounds = array<i64: 1, 1, 1>, scalar_prefetch = 0 : i64, scratch_operands = 0 : i64, tpu.core_type = #tpu.core_type<tc>, window_params = [{transform_indices = @transform_0, window_bounds = array<i64: 8, 128>}, {transform_indices = @transform_1, window_bounds = array<i64: 128, 128>}, {transform_indices = @transform_2, window_bounds = array<i64: 1, 128>}, {transform_indices = @transform_3, window_bounds = array<i64: 8, 128>}]} {
    %c0_i32 = arith.constant 0 : i32
    %0 = arith.cmpi eq, %arg2, %c0_i32 : i32
    %1 = arith.extui %0 : i1 to i32
    %c0_i32_0 = arith.constant 0 : i32
    %2 = arith.cmpi ne, %1, %c0_i32_0 : i32
    scf.if %2 {
      %cst_10 = arith.constant 0.000000e+00 : f32
      %12 = vector.broadcast %cst_10 : f32 to vector<8x128xf32>
      %c0_11 = arith.constant 0 : index
      %c0_12 = arith.constant 0 : index
      %13 = vector.load %arg6[%c0_11, %c0_12] : memref<8x128xf32, #tpu.memory_space<vmem>>, vector<8x128xf32>
      tpu.vector_store %arg6[%c0_11, %c0_12], %12 {strides = array<i32>} : memref<8x128xf32, #tpu.memory_space<vmem>>, vector<8x128xf32>,
    } else {
    }
    %c0 = arith.constant 0 : index
    %c0_1 = arith.constant 0 : index
    %3 = vector.load %arg6[%c0, %c0_1] : memref<8x128xf32, #tpu.memory_space<vmem>>, vector<8x128xf32>
    %c0_2 = arith.constant 0 : index
    %c0_3 = arith.constant 0 : index
    %4 = vector.load %arg3[%c0_2, %c0_3] : memref<8x128xf32, #tpu.memory_space<vmem>>, vector<8x128xf32>
    %c0_4 = arith.constant 0 : index
    %c0_5 = arith.constant 0 : index
    %5 = vector.load %arg4[%c0_4, %c0_5] : memref<128x128xf32, #tpu.memory_space<vmem>>, vector<128x128xf32>
    %cst = arith.constant dense<0.000000e+00> : vector<8x128xf32>
    %6 = tpu.matmul %4, %5, %cst {dimension_numbers = #tpu.dot_dimension_numbers<[1], [0], [0], [1], [0, 0, 1, 1], [], []>} : vector<8x128xf32>, vector<128x128xf32>, vector<8x128xf32> -> vector<8x128xf32>
    %7 = arith.addf %3, %6 : vector<8x128xf32>
    %c0_6 = arith.constant 0 : index
    %c0_7 = arith.constant 0 : index
    %8 = vector.load %arg6[%c0_6, %c0_7] : memref<8x128xf32, #tpu.memory_space<vmem>>, vector<8x128xf32>
    tpu.vector_store %arg6[%c0_6, %c0_7], %7 {strides = array<i32>} : memref<8x128xf32, #tpu.memory_space<vmem>>, vector<8x128xf32>,
    %c0_i32_8 = arith.constant 0 : i32
    %9 = arith.cmpi eq, %arg2, %c0_i32_8 : i32
    %10 = arith.extui %9 : i1 to i32
    %c0_i32_9 = arith.constant 0 : i32
    %11 = arith.cmpi ne, %10, %c0_i32_9 : i32
    scf.if %11 {
      %c0_10 = arith.constant 0 : index
      %c0_11 = arith.constant 0 : index
      %12 = vector.load %arg6[%c0_10, %c0_11] : memref<8x128xf32, #tpu.memory_space<vmem>>, vector<8x128xf32>
      %c0_12 = arith.constant 0 : index
      %c0_13 = arith.constant 0 : index
      %13 = vector.load %arg5[%c0_12, %c0_13] : memref<1x128xf32, #tpu.memory_space<vmem>>, vector<1x128xf32>
      %14 = vector.broadcast %13 : vector<1x128xf32> to vector<8x128xf32>
      %15 = arith.addf %12, %14 : vector<8x128xf32>
      %c0_14 = arith.constant 0 : index
      %c0_15 = arith.constant 0 : index
      %16 = vector.load %arg6[%c0_14, %c0_15] : memref<8x128xf32, #tpu.memory_space<vmem>>, vector<8x128xf32>
      tpu.vector_store %arg6[%c0_14, %c0_15], %15 {strides = array<i32>} : memref<8x128xf32, #tpu.memory_space<vmem>>, vector<8x128xf32>,
    } else {
    }
    return
  }
  func.func @transform_0(%arg0: i32, %arg1: i32, %arg2: i32) -> (i32, i32) {
    %c0_i32 = arith.constant 0 : i32
    return %arg0, %arg2 : i32, i32
  }
  func.func @transform_1(%arg0: i32, %arg1: i32, %arg2: i32) -> (i32, i32) {
    %c0_i32 = arith.constant 0 : i32
    return %arg2, %arg1 : i32, i32
  }
  func.func @transform_2(%arg0: i32, %arg1: i32, %arg2: i32) -> (i32, i32) {
    %c0_i32 = arith.constant 0 : i32
    %c0_i32_0 = arith.constant 0 : i32
    return %c0_i32, %arg1 : i32, i32
  }
  func.func @transform_3(%arg0: i32, %arg1: i32, %arg2: i32) -> (i32, i32) {
    %c0_i32 = arith.constant 0 : i32
    return %arg0, %arg1 : i32, i32
  }
}

</mosaic_0001>

<bundles_post_ra>
// kernel: linear_prob_forward.1
= control target key start
LH: loop header
LB: loop body
LE: loop exit
PB: predicated region body
PF: predicated region fallthrough
CT: control target
= control target key end

     0   :  { %s193_s0 = inlined_call_operand.vmem [shape: f32[8,128], index: 0, kind: input, shape index: {}]   ;;  %s194_s1 = inlined_call_operand.vmem [shape: f32[128,128], index: 1, kind: input, shape index: {}]   ;;  %s195_s2 = inlined_call_operand.vmem [shape: f32[1,128], index: 2, kind: input, shape index: {}]   ;;  %s196_s3 = inlined_call_operand.hbm [shape: f32[8,128], index: 3, kind: output, shape index: {}]  }
   0x1   :  { %v37_v0 = vld [vmem:[%s194_s1 + $0x78] sm:$0xff]  ;;  %v36_v1 = vld [vmem:[%s194_s1 + $0x70] sm:$0xff]  ;;  %v35_v2 = vld [vmem:[%s194_s1 + $0x68] sm:$0xff] }
   0x2   :  { %38 = vmatpush.msra.mxu0 %v37_v0  ;;  %v34_v3 = vld [vmem:[%s194_s1 + $0x60] sm:$0xff] }
   0x4   :  { %39 = vmatpush.msra.mxu0 %v36_v1 }
   0x6   :  { %40 = vmatpush.msra.mxu0 %v35_v2 }
   0x7   :  { %8 = vsyncpa [#allocation3], 0  ;;  %v33_v4 = vld [vmem:[%s194_s1 + $0x58] sm:$0xff]  ;;  %v32_v5 = vld [vmem:[%s194_s1 + $0x50] sm:$0xff]  ;;  %s115_s21 = smov [#allocation2]   ;;  %s77_s25 = sshll.u32 %s196_s3, 4  ;;  %s78_s25 = int_to_ptr.hbm [resolvable:$true] %s77_s25 }
   0x8   :  { %41 = vmatpush.msra.mxu0 %v34_v3  ;;  %v31_v6 = vld [vmem:[%s194_s1 + $0x48] sm:$0xff]  ;;  %v30_v7 = vld [vmem:[%s194_s1 + $0x40] sm:$0xff]  ;;  %v29_v8 = vld [vmem:[%s194_s1 + $0x38] sm:$0xff]  ;;  %s75_s22 = sshll.u32 %s115_s21, 4  ;;  %s76_s22 = int_to_ptr.vmem [resolvable:$true] %s75_s22 }
   0x9   :  { %v28_v9 = vld [vmem:[%s194_s1 + $0x30] sm:$0xff]  ;;  %v27_v10 = vld [vmem:[%s194_s1 + $0x28] sm:$0xff]  ;;  %v26_v11 = vld [vmem:[%s194_s1 + $0x20] sm:$0xff] }
   0xa   :  { %42 = vmatpush.msra.mxu0 %v33_v4  ;;  %v25_v12 = vld [vmem:[%s194_s1 + $0x18] sm:$0xff]  ;;  %v24_v13 = vld [vmem:[%s194_s1 + $0x10] sm:$0xff]  ;;  %v23_v14 = vld [vmem:[%s194_s1 + $0x8] sm:$0xff] }
   0xb   :  { %v22_v15 = vld [vmem:[%s194_s1] sm:$0xff] }
   0xc   :  { %43 = vmatpush.msra.mxu0 %v32_v5  ;;  %v21_v16 = vld [vmem:[%s193_s0] sm:$0xff] }
   0xd   :  { %v88_v17 = vld [vmem:[%s195_s2] ss:$0 sm:$0xff] }
   0xe   :  { %44 = vmatpush.msra.mxu0 %v31_v6 }
  0x10   :  { %45 = vmatpush.msra.mxu0 %v30_v7 }
  0x12   :  { %46 = vmatpush.msra.mxu0 %v29_v8 }
  0x14   :  { %47 = vmatpush.msra.mxu0 %v28_v9 }
  0x16   :  { %48 = vmatpush.msra.mxu0 %v27_v10 }
  0x18   :  { %49 = vmatpush.msra.mxu0 %v26_v11 }
  0x1a   :  { %50 = vmatpush.msra.mxu0 %v25_v12 }
  0x1c   :  { %51 = vmatpush.msra.mxu0 %v24_v13 }
  0x1e   :  { %52 = vmatpush.msra.mxu0 %v23_v14 }
  0x20   :  { %53 = vmatpush.msra.mxu0 %v22_v15 }
  0x21   :  { %54 = vmatmul.f32.vlgmr.msra.gmra.mxu0 %v21_v16 }
  0x9e   :  { %v55_v18 = vpop.f32.mrf.mxu0 }
  0x9f   :  { %v68_v19 = vadd.f32 %v88_v17, %v55_v18 }
  0xa1   :  { %69 = vst [vmem:[#allocation2] sm:$0xff] %v68_v19 }
  0xa2   :  { %80 = dma.vmem_to_hbm [thread:$0]  %s76_s22, 128, %s78_s25, [#allocation3]  }
  0xa3   :  { %113 = dma.done.wait [#allocation3], 128  }
  0xa4   :  { %114 = vsyncadd [#allocation3], 4294967168 }
  0xa5   :  { %85 = vsyncpa [#allocation3], 1 }

</bundles_post_ra>
